<compile_context>
chip_gen: v7x
topology: tpu7x:2x2x1
jax: 0.10.0
libtpu: 0.0.40
codegen_flags: <defaults>
</compile_context>

<pallas_src>
import math

import jax
import jax.numpy as jnp
from jax.experimental import pallas as pl
from jax.experimental.pallas import tpu as pltpu

_INV_SQRT2 = 0.7071067811865476


def _round_up(a, m):
    return ((a + m - 1) // m) * m


def _cdiv(a, b):
    return -(-a // b)


def _pad_axis(a, axis, target):
    pad = target - a.shape[axis]
    if pad <= 0:
        return a
    widths = [(0, 0)] * a.ndim
    widths[axis] = (0, pad)
    return jnp.pad(a, widths)


def _gelu_exact(h):
    # Matches torch.nn.GELU(approximate='none').
    return 0.5 * h * (1.0 + jax.lax.erf(h * _INV_SQRT2))


def _mlp_kernel_fused(x_ref, w1_ref, b1_ref, w2_ref, b2_ref, o_ref, acc_ref):
    """fc1 -> GELU -> fc2 fused; hidden dim (grid axis 2) is the reduction axis."""
    k = pl.program_id(2)

    @pl.when(k == 0)
    def _init():
        acc_ref[...] = jnp.zeros_like(acc_ref)

    x = x_ref[...].astype(w1_ref.dtype)
    h = jnp.dot(x, w1_ref[...], preferred_element_type=jnp.float32)
    h = _gelu_exact(h + b1_ref[...])
    acc_ref[...] += jnp.dot(h.astype(w2_ref.dtype), w2_ref[...],
                            preferred_element_type=jnp.float32)

    @pl.when(k == pl.num_programs(2) - 1)
    def _finalize():
        o_ref[...] = (acc_ref[...] + b2_ref[...]).astype(o_ref.dtype)


def _mlp_kernel_cached(x_ref, w1_ref, b1_ref, w2_ref, b2_ref, o_ref,
                       acc_ref, h_ref):
    """Like _mlp_kernel_fused, but GELU(fc1) for each hidden slice is computed only
    on the first out-column block (j == 0), cached in VMEM, and reused for every
    other out-column block of the same row tile (no fc1 recompute / w1 re-read)."""
    j = pl.program_id(1)
    k = pl.program_id(2)

    @pl.when(k == 0)
    def _init():
        acc_ref[...] = jnp.zeros_like(acc_ref)

    @pl.when(j == 0)
    def _fc1():
        x = x_ref[...].astype(w1_ref.dtype)
        h = jnp.dot(x, w1_ref[...], preferred_element_type=jnp.float32)
        h_ref[k] = _gelu_exact(h + b1_ref[...]).astype(h_ref.dtype)

    acc_ref[...] += jnp.dot(h_ref[k], w2_ref[...],
                            preferred_element_type=jnp.float32)

    @pl.when(k == pl.num_programs(2) - 1)
    def _finalize():
        o_ref[...] = (acc_ref[...] + b2_ref[...]).astype(o_ref.dtype)


def _vmem_capacity_bytes():
    try:
        info = pltpu.get_tpu_info()
        cap = getattr(info, "vmem_capacity_bytes", None)
        if cap:
            return int(cap)
    except Exception:
        pass
    return 64 * 1024 * 1024  # conservative fallback (v7x-sized VMEM)


def mlp_pallas(x, w1, b1, w2, b2, *, tm=None, tk=512, tn=1024,
               compute_dtype=jnp.bfloat16):
    """Fused Mlp forward: dropout(fc2(GELU(fc1(x)))), dropout p = 0.0.

    x: (B, N, C_in); w1: (C_in, H); b1: (H,); w2: (H, C_out); b2: (C_out,).

    compute_dtype: dtype of the MXU operands (weights / cached activations). Default
    bf16 (native MXU dtype, half the weight DMA bytes); accumulation is always f32.
    Use jnp.float32 only for parity testing against the f32 PyTorch module.
    """
    B, N, C_in = x.shape
    H = w1.shape[1]
    C_out = w2.shape[1]
    out_dtype = x.dtype
    cdt = jnp.dtype(compute_dtype)
    rows = B * N

    cap = _vmem_capacity_bytes()

    # ---- tile selection (generation aware) ---------------------------------
    sub = 16 if cdt == jnp.dtype(jnp.bfloat16) else 8
    if tm is None:
        # Bigger row tiles on 128-MiB-VMEM parts (v5e/v6e): fewer weight re-streams.
        tm = 512 if (cap >= 96 * 2**20 and rows >= 2048) else 256
    tm = max(sub, (int(tm) // sub) * sub)
    tm = min(tm, _round_up(rows, sub))
    tk = _round_up(min(int(tk), _round_up(H, 128)), 128)
    tn = _round_up(min(int(tn), _round_up(C_out, 128)), 128)

    x_isz = jnp.dtype(x.dtype).itemsize
    c_isz = cdt.itemsize
    o_isz = jnp.dtype(out_dtype).itemsize

    def _plan(tm_, tk_, tn_, force_fused=False):
        Hp_ = _round_up(H, tk_)
        Cp_ = _round_up(C_out, tn_)
        nk_, nj_ = Hp_ // tk_, Cp_ // tn_
        use_cache_ = (nj_ > 1) and not force_fused
        est_ = (2 * tm_ * C_in * x_isz          # x blocks (double buffered)
                + 2 * C_in * tk_ * c_isz        # w1 blocks
                + 2 * tk_ * tn_ * c_isz         # w2 blocks
                + 2 * 8 * (tk_ + tn_) * 4       # b1 / b2 blocks (sublane-padded)
                + 2 * tm_ * tn_ * o_isz         # output blocks
                + tm_ * tn_ * 4                 # f32 accumulator scratch
                + 3 * tm_ * tk_ * 4)            # fc1/GELU f32 temporaries
        if use_cache_:
            est_ += nk_ * tm_ * tk_ * c_isz     # cached GELU(fc1) activations
        return Hp_, Cp_, nk_, nj_, use_cache_, est_

    budget = int(0.55 * cap)
    while True:
        Hp, Cp, nk, nj, use_cache, est = _plan(tm, tk, tn)
        if est <= budget:
            break
        if tk > 128:
            tk = max(128, (tk // 2 // 128) * 128)
        elif tn > 128:
            tn = max(128, (tn // 2 // 128) * 128)
        elif tm > sub:
            tm = max(sub, (tm // 2 // sub) * sub)
        else:
            break

    # ---- make sure at least one parallel axis has >= 2 blocks (v7x: 2 TCs) --
    n_i = _cdiv(rows, tm)
    force_fused = False
    if n_i == 1 and nj == 1:
        if rows > tm // 2 and tm // 2 >= sub and (tm // 2) % sub == 0:
            tm //= 2
        elif tn >= 256 and tn % 256 == 0:
            tn //= 2
            force_fused = True   # keep the split (j) axis 'parallel'; no h-cache dep
    Hp, Cp, nk, nj, use_cache, est = _plan(tm, tk, tn, force_fused)
    n_i = _cdiv(rows, tm)

    # ---- operand prep --------------------------------------------------------
    # Hidden axis zero-padded (exact: GELU(0)=0 meets zero w2 rows); out-column axis
    # of w2/b2 padded so output stores stay lane-dense (padded cols sliced off below).
    # Rows are NOT padded: Pallas masks the edge row block on load/store.
    # TODO(synk): for production use, pre-pad / pre-cast the weights once at init time
    # (all pads/casts below are no-ops when shapes are aligned and already compute_dtype).
    x2d = x.reshape(rows, C_in)                 # cast to compute dtype happens in-kernel
    w1p = _pad_axis(w1, 1, Hp).astype(cdt)
    b1p = _pad_axis(b1.reshape(1, H).astype(jnp.float32), 1, Hp)
    w2p = _pad_axis(_pad_axis(w2, 0, Hp), 1, Cp).astype(cdt)
    b2p = _pad_axis(b2.reshape(1, C_out).astype(jnp.float32), 1, Cp)

    grid = (n_i, nj, nk)

    if use_cache:
        # w1 is only consumed at j == 0; freeze its block index afterwards so it is
        # not re-streamed from HBM for every out-column block.
        w1_map = lambda i, j, k: (0, jnp.where(j == 0, k, 0))
        kernel = _mlp_kernel_cached
        scratch = [pltpu.VMEM((tm, tn), jnp.float32),
                   pltpu.VMEM((nk, tm, tk), cdt)]
        dims = ("parallel", "arbitrary", "arbitrary")   # j > 0 depends on j == 0
    else:
        w1_map = lambda i, j, k: (0, k)
        kernel = _mlp_kernel_fused
        scratch = [pltpu.VMEM((tm, tn), jnp.float32)]
        dims = ("parallel", "parallel", "arbitrary")

    max_limit = int(0.75 * cap)                 # ~96 MiB on v5e/v6e, ~48 MiB on v7x
    vmem_limit = int(min(max(2 * est, 32 * 2**20), max_limit))
    vmem_limit = int(max(vmem_limit, min(est + (4 << 20), int(0.9 * cap))))

    cost = pl.CostEstimate(
        flops=2 * rows * H * (C_in + C_out),
        transcendentals=rows * H,
        bytes_accessed=(rows * C_in * x_isz + (C_in * H + H * C_out) * c_isz
                        + (H + C_out) * 4 + rows * C_out * o_isz))

    out2d = pl.pallas_call(
        kernel,
        out_shape=jax.ShapeDtypeStruct((rows, Cp), out_dtype),
        grid_spec=pltpu.PrefetchScalarGridSpec(
            num_scalar_prefetch=0,
            grid=grid,
            in_specs=[
                pl.BlockSpec((tm, C_in), lambda i, j, k: (i, 0)),   # x rows
                pl.BlockSpec((C_in, tk), w1_map),                   # w1 hidden slice
                pl.BlockSpec((1, tk), lambda i, j, k: (0, k)),      # b1 hidden slice
                pl.BlockSpec((tk, tn), lambda i, j, k: (k, j)),     # w2 tile
                pl.BlockSpec((1, tn), lambda i, j, k: (0, j)),      # b2 out-col slice
            ],
            out_specs=pl.BlockSpec((tm, tn), lambda i, j, k: (i, j)),
            scratch_shapes=scratch,
        ),
        compiler_params=pltpu.CompilerParams(
            dimension_semantics=dims,
            vmem_limit_bytes=vmem_limit,
        ),
        cost_estimate=cost,
    )(x2d, w1p, b1p, w2p, b2p)

    # Dropout(p=0.0) == identity (module default).
    # TODO(synk): training-mode dropout with p > 0 is not implemented.
    out = out2d[:, :C_out] if Cp != C_out else out2d
    return out.reshape(B, N, C_out)


def init_mlp_params(key, in_features, hidden_features, out_features, dtype=jnp.float32):
    """Deterministic init matching nn.Linear's uniform(-1/sqrt(fan_in), +1/sqrt(fan_in))."""
    k1, k2, k3, k4 = jax.random.split(key, 4)
    bound1 = 1.0 / math.sqrt(in_features)
    bound2 = 1.0 / math.sqrt(hidden_features)
    w1 = jax.random.uniform(k1, (in_features, hidden_features), dtype, -bound1, bound1)
    b1 = jax.random.uniform(k2, (hidden_features,), dtype, -bound1, bound1)
    w2 = jax.random.uniform(k3, (hidden_features, out_features), dtype, -bound2, bound2)
    b2 = jax.random.uniform(k4, (out_features,), dtype, -bound2, bound2)
    return w1, b1, w2, b2


def _mlp_reference(x, w1, b1, w2, b2):
    rows = x.shape[0] * x.shape[1]
    h = x.reshape(rows, -1) @ w1 + b1
    h = 0.5 * h * (1.0 + jax.lax.erf(h * _INV_SQRT2))
    return (h @ w2 + b2).reshape(x.shape[0], x.shape[1], w2.shape[1])


if __name__ == "__main__":
    # Small shapes consistent with the module: (batch, tokens, features).
    B, N = 2, 8
    in_features, hidden_features, out_features = 32, 64, 32

    key = jax.random.PRNGKey(0)
    kx, kp, kp2 = jax.random.split(key, 3)
    x = jax.random.normal(kx, (B, N, in_features), dtype=jnp.float32)
    w1, b1, w2, b2 = init_mlp_params(kp, in_features, hidden_features, out_features)
    ref = _mlp_reference(x, w1, b1, w2, b2)

    # 1) f32 operand path (exact parity with the PyTorch module).
    out_f32 = jax.block_until_ready(
        mlp_pallas(x, w1, b1, w2, b2, compute_dtype=jnp.float32))
    assert out_f32.shape == ref.shape
    assert jnp.allclose(out_f32, ref, atol=1e-5, rtol=1e-5), "f32 mismatch vs reference"

    # 2) Default bf16 operand path (fast MXU path, f32 accumulation) — looser tolerance.
    out_bf16 = jax.block_until_ready(mlp_pallas(x, w1, b1, w2, b2))
    assert jnp.allclose(out_bf16.astype(jnp.float32), ref, atol=5e-2, rtol=5e-2), \
        "bf16 mismatch vs reference"

    # 3) Wide-output path exercising the h-cache kernel (Cp // tn > 1).
    w1b, b1b, w2b, b2b = init_mlp_params(kp2, in_features, hidden_features, 256)
    refb = _mlp_reference(x, w1b, b1b, w2b, b2b)
    out_wide = jax.block_until_ready(
        mlp_pallas(x, w1b, b1b, w2b, b2b, tn=128, compute_dtype=jnp.float32))
    assert jnp.allclose(out_wide, refb, atol=1e-5, rtol=1e-5), "cached-path mismatch"

    print("KERNEL_OK")
</pallas_src>

<mosaic_0001>
module attributes {stable_mosaic.version = 11 : i64} {
  func.func @_mlp_kernel_fused(%arg0: i32, %arg1: i32, %arg2: i32, %arg3: memref<8x32xf32, #tpu.memory_space<vmem>>, %arg4: memref<32x128xf32, #tpu.memory_space<vmem>>, %arg5: memref<1x128xf32, #tpu.memory_space<vmem>>, %arg6: memref<128x128xf32, #tpu.memory_space<vmem>>, %arg7: memref<1x128xf32, #tpu.memory_space<vmem>>, %arg8: memref<8x128xf32, #tpu.memory_space<vmem>>, %arg9: memref<8x128xf32, #tpu.memory_space<vmem>>) attributes {dimension_semantics = [#tpu.dimension_semantics<parallel>, #tpu.dimension_semantics<parallel>, #tpu.dimension_semantics<arbitrary>], iteration_bounds = array<i64: 2, 1, 1>, scalar_prefetch = 0 : i64, scratch_operands = 1 : i64, tpu.core_type = #tpu.core_type<tc>, window_params = [{transform_indices = @transform_0, window_bounds = array<i64: 8, 32>}, {transform_indices = @transform_1, window_bounds = array<i64: 32, 128>}, {transform_indices = @transform_2, window_bounds = array<i64: 1, 128>}, {transform_indices = @transform_3, window_bounds = array<i64: 128, 128>}, {transform_indices = @transform_4, window_bounds = array<i64: 1, 128>}, {transform_indices = @transform_5, window_bounds = array<i64: 8, 128>}]} {
    %c0_i32 = arith.constant 0 : i32
    %0 = arith.cmpi eq, %arg2, %c0_i32 : i32
    %1 = arith.extui %0 : i1 to i32
    %c0_i32_0 = arith.constant 0 : i32
    %2 = arith.cmpi ne, %1, %c0_i32_0 : i32
    scf.if %2 {
      %cst_18 = arith.constant 0.000000e+00 : f32
      %25 = vector.broadcast %cst_18 : f32 to vector<8x128xf32>
      %c0_19 = arith.constant 0 : index
      %c0_20 = arith.constant 0 : index
      %26 = vector.load %arg9[%c0_19, %c0_20] : memref<8x128xf32, #tpu.memory_space<vmem>>, vector<8x128xf32>
      tpu.vector_store %arg9[%c0_19, %c0_20], %25 {strides = array<i32>} : memref<8x128xf32, #tpu.memory_space<vmem>>, vector<8x128xf32>,
    } else {
    }
    %c0 = arith.constant 0 : index
    %c0_1 = arith.constant 0 : index
    %3 = vector.load %arg3[%c0, %c0_1] : memref<8x32xf32, #tpu.memory_space<vmem>>, vector<8x32xf32>
    %c0_2 = arith.constant 0 : index
    %c0_3 = arith.constant 0 : index
    %4 = vector.load %arg4[%c0_2, %c0_3] : memref<32x128xf32, #tpu.memory_space<vmem>>, vector<32x128xf32>
    %cst = arith.constant dense<0.000000e+00> : vector<8x128xf32>
    %5 = tpu.matmul %3, %4, %cst {dimension_numbers = #tpu.dot_dimension_numbers<[1], [0], [0], [1], [0, 0, 1, 1], [], []>} : vector<8x32xf32>, vector<32x128xf32>, vector<8x128xf32> -> vector<8x128xf32>
    %c0_4 = arith.constant 0 : index
    %c0_5 = arith.constant 0 : index
    %6 = vector.load %arg5[%c0_4, %c0_5] : memref<1x128xf32, #tpu.memory_space<vmem>>, vector<1x128xf32>
    %7 = vector.broadcast %6 : vector<1x128xf32> to vector<8x128xf32>
    %8 = arith.addf %5, %7 : vector<8x128xf32>
    %cst_6 = arith.constant 5.000000e-01 : f32
    %9 = vector.broadcast %cst_6 : f32 to vector<8x128xf32>
    %10 = arith.mulf %9, %8 : vector<8x128xf32>
    %cst_7 = arith.constant 0.707106769 : f32
    %11 = vector.broadcast %cst_7 : f32 to vector<8x128xf32>
    %12 = arith.mulf %8, %11 : vector<8x128xf32>
    %13 = math.erf %12 : vector<8x128xf32>
    %cst_8 = arith.constant 1.000000e+00 : f32
    %14 = vector.broadcast %cst_8 : f32 to vector<8x128xf32>
    %15 = arith.addf %14, %13 : vector<8x128xf32>
    %16 = arith.mulf %10, %15 : vector<8x128xf32>
    %c0_9 = arith.constant 0 : index
    %c0_10 = arith.constant 0 : index
    %17 = vector.load %arg9[%c0_9, %c0_10] : memref<8x128xf32, #tpu.memory_space<vmem>>, vector<8x128xf32>
    %c0_11 = arith.constant 0 : index
    %c0_12 = arith.constant 0 : index
    %18 = vector.load %arg6[%c0_11, %c0_12] : memref<128x128xf32, #tpu.memory_space<vmem>>, vector<128x128xf32>
    %cst_13 = arith.constant dense<0.000000e+00> : vector<8x128xf32>
    %19 = tpu.matmul %16, %18, %cst_13 {dimension_numbers = #tpu.dot_dimension_numbers<[1], [0], [0], [1], [0, 0, 1, 1], [], []>} : vector<8x128xf32>, vector<128x128xf32>, vector<8x128xf32> -> vector<8x128xf32>
    %20 = arith.addf %17, %19 : vector<8x128xf32>
    %c0_14 = arith.constant 0 : index
    %c0_15 = arith.constant 0 : index
    %21 = vector.load %arg9[%c0_14, %c0_15] : memref<8x128xf32, #tpu.memory_space<vmem>>, vector<8x128xf32>
    tpu.vector_store %arg9[%c0_14, %c0_15], %20 {strides = array<i32>} : memref<8x128xf32, #tpu.memory_space<vmem>>, vector<8x128xf32>,
    %c0_i32_16 = arith.constant 0 : i32
    %22 = arith.cmpi eq, %arg2, %c0_i32_16 : i32
    %23 = arith.extui %22 : i1 to i32
    %c0_i32_17 = arith.constant 0 : i32
    %24 = arith.cmpi ne, %23, %c0_i32_17 : i32
    scf.if %24 {
      %c0_18 = arith.constant 0 : index
      %c0_19 = arith.constant 0 : index
      %25 = vector.load %arg9[%c0_18, %c0_19] : memref<8x128xf32, #tpu.memory_space<vmem>>, vector<8x128xf32>
      %c0_20 = arith.constant 0 : index
      %c0_21 = arith.constant 0 : index
      %26 = vector.load %arg7[%c0_20, %c0_21] : memref<1x128xf32, #tpu.memory_space<vmem>>, vector<1x128xf32>
      %27 = vector.broadcast %26 : vector<1x128xf32> to vector<8x128xf32>
      %28 = arith.addf %25, %27 : vector<8x128xf32>
      %c0_22 = arith.constant 0 : index
      %c0_23 = arith.constant 0 : index
      %29 = vector.load %arg8[%c0_22, %c0_23] : memref<8x128xf32, #tpu.memory_space<vmem>>, vector<8x128xf32>
      tpu.vector_store %arg8[%c0_22, %c0_23], %28 {strides = array<i32>} : memref<8x128xf32, #tpu.memory_space<vmem>>, vector<8x128xf32>,
    } else {
    }
    return
  }
  func.func @transform_0(%arg0: i32, %arg1: i32, %arg2: i32) -> (i32, i32) {
    %c0_i32 = arith.constant 0 : i32
    %c0_i32_0 = arith.constant 0 : i32
    return %arg0, %c0_i32 : i32, i32
  }
  func.func @transform_1(%arg0: i32, %arg1: i32, %arg2: i32) -> (i32, i32) {
    %c0_i32 = arith.constant 0 : i32
    %c0_i32_0 = arith.constant 0 : i32
    return %c0_i32, %arg2 : i32, i32
  }
  func.func @transform_2(%arg0: i32, %arg1: i32, %arg2: i32) -> (i32, i32) {
    %c0_i32 = arith.constant 0 : i32
    %c0_i32_0 = arith.constant 0 : i32
    return %c0_i32, %arg2 : i32, i32
  }
  func.func @transform_3(%arg0: i32, %arg1: i32, %arg2: i32) -> (i32, i32) {
    %c0_i32 = arith.constant 0 : i32
    return %arg2, %arg1 : i32, i32
  }
  func.func @transform_4(%arg0: i32, %arg1: i32, %arg2: i32) -> (i32, i32) {
    %c0_i32 = arith.constant 0 : i32
    %c0_i32_0 = arith.constant 0 : i32
    return %c0_i32, %arg1 : i32, i32
  }
  func.func @transform_5(%arg0: i32, %arg1: i32, %arg2: i32) -> (i32, i32) {
    %c0_i32 = arith.constant 0 : i32
    return %arg0, %arg1 : i32, i32
  }
}

</mosaic_0001>

<bundles_post_ra>
// kernel: tpu_custom_call.1
= control target key start
LH: loop header
LB: loop body
LE: loop exit
PB: predicated region body
PF: predicated region fallthrough
CT: control target
= control target key end

     0   :  { %10 = vsyncpa [#allocation4], 0  ;;  %s1367_s0 = inlined_call_operand.hbm [shape: f32[16,32], index: 0, kind: input, shape index: {}]   ;;  %s1368_s1 = inlined_call_operand.hbm [shape: f32[32,128], index: 1, kind: input, shape index: {}]   ;;  %s1369_s2 = inlined_call_operand.vmem [shape: f32[1,128], index: 2, kind: input, shape index: {}]   ;;  %s1370_s3 = inlined_call_operand.hbm [shape: f32[128,128], index: 3, kind: input, shape index: {}]   ;;  %s1371_s4 = inlined_call_operand.vmem [shape: f32[1,128], index: 4, kind: input, shape index: {}]   ;;  %s1372_s5 = inlined_call_operand.hbm [shape: f32[16,128], index: 5, kind: output, shape index: {}]  }
   0x1   :  { %12 = vsyncpa [#allocation4 + $0x1], 0 }
   0x2   :  { %13 = vsyncpa [#allocation7], 0 }
   0x3   :  { %14 = vsyncpa [#allocation5], 0 }
   0x4   :  { %16 = vsyncpa [#allocation5 + $0x1], 0  ;;  %s1104_s18 = smov 0   ;;  %s1106_s19 = smov 0  }
   0x5   :  { %s1108_s20 = smov 0   ;;  %s1110_s21 = smov 0  }
   0x6   :  { %s1112_s22 = smov 0   ;;  %s1114_s23 = smov 0  }
   0x7 LB: > { %s681_s24 = sadd.s32 4294967295, %s1063_s23   ;;  %s682_s25 = sadd.s32 4294967294, %s1063_s23   ;;  %s1063_s23 = sphi %s1114_s23, %s22_s23   ;;  %s1059_s22 = sphi %s1112_s22, %s1394_s22   ;;  %s1055_s21 = sphi %s1110_s21, %s1393_s21   ;;  %s1051_s20 = sphi %s1108_s20, %s1392_s20   ;;  %s1047_s19 = sphi %s1106_s19, %s1391_s19   ;;  %s1043_s18 = sphi %s1104_s18, %s1390_s18  }
   0x8   : > { %p61_p0 = scmp.ne.s32.totalorder %s1047_s19, %s1043_s18  ;;  %p1138_p1 = scmp.eq.s32.totalorder %s681_s24, 0 }
   0x9   : > { %p1142_p2 = scmp.eq.s32.totalorder %s681_s24, 1  ;;  %p199_p3 = scmp.eq.s32.totalorder %s682_s25, 1 }
   0xa   : > { %s1377_s26 = scalar_select %p1138_p1, 1, 0 }
   0xb   : > { %p1148_p4 = por %p1138_p1, %p61_p0  ;;  %p683_p5 = scmp.ge.s32.totalorder %s1063_s23, 1 }
   0xc   : > { %p1153_p6 = por %p199_p3, %p61_p0  ;;  %p206_p7 = scmp.lt.s32.totalorder %s1063_s23, 3 }
   0xd   : > { %s1379_s28 = scalar_select %p1148_p4, 1, 0 }
   0xe   : > { %s1380_s29 = scalar_select %p1153_p6, 1, 0 }
   0xf   : > { %p1158_p8 = pnand %p683_p5, %p206_p7  ;;  %s1065_s6 = smov [#allocation6]  }
  0x10   : > { %s220_s7 = sshll.u32 %s1065_s6, 4  ;;  %s1066_s9 = smov [#allocation8]   ;;  %s1162_s7 = int_to_ptr.vmem [resolvable:$true] %s220_s7 }
  0x11   : > { %p813_p9 = pneg %p1158_p8  ;;  %s243_s10 = sshll.u32 %s1066_s9, 4  ;;  %s1173_s10 = int_to_ptr.vmem [resolvable:$true] %s243_s10 }
  0x12   : > { %s891_s13 = scalar_lea.hbm %s1368_s1, 512 }
  0x13   : > { %p1169_p11 = pnand %p813_p9, %p1138_p1  ;;  %p892_p12 = scmp.ne.s32.totalorder %s1368_s1, %s891_s13 }
  0x14   : > { %p898_p5 = scmp.lt.u32.totalorder %s891_s13, %s1368_s1 }
  0x15   : > { %p893_p13 = pneg %p1169_p11 }
  0x17   : > { %p894_p0 = pnand %p893_p13, %p892_p12 }
  0x19   : > { %p895_p3 = pneg %p894_p0 }
  0x1b   : > { %p900_p7 = pnand %p898_p5, %p895_p3 }
  0x1d   : > { %903 = shalt.err (!%p900_p7)
}
  0x1e   : > { %s904_s24 = scalar_lea.vmem %s1162_s7, 512  ;;  %p912_p1 = scmp.lt.s32.totalorder %s1162_s7, %s1162_s7 }
  0x1f   : > { %p905_p9 = scmp.ne.s32.totalorder %s1162_s7, %s904_s24  ;;  %p913_p12 = scmp.lt.s32.totalorder %s904_s24, %s904_s24 }
  0x21   : > { %p907_p10 = pnand %p905_p9, %p893_p13  ;;  %p914_p0 = por %p913_p12, %p912_p1 }
  0x23   : > { %p908_p6 = pneg %p907_p10 }
  0x25   : > { %p915_p4 = pnand %p914_p0, %p908_p6 }
  0x27   : > { %918 = shalt.err (!%p915_p4)
}
  0x28   : > { %s1067_s25 = smov 128   ;;  %s1068_s6 = smov 8  }
  0x29   : > { %816 = dma.hbm_to_vmem [thread:$0]  (!%p1169_p11), %s1368_s1, 512, %s1162_s7, [#allocation7], %s1067_s25, %s1067_s25, %s1068_s6  }
  0x2a   : > { %s919_s14 = scalar_lea.hbm %s1370_s3, 2048 }
  0x2b   : > { %p920_p1 = scmp.ne.s32.totalorder %s1370_s3, %s919_s14  ;;  %p926_p10 = scmp.lt.u32.totalorder %s919_s14, %s1370_s3 }
  0x2d   : > { %p922_p4 = pnand %p920_p1, %p893_p13 }
  0x2f   : > { %p923_p6 = pneg %p922_p4 }
  0x31   : > { %p928_p3 = pnand %p926_p10, %p923_p6 }
  0x33   : > { %931 = shalt.err (!%p928_p3)
}
  0x34   : > { %s932_s7 = scalar_lea.vmem %s1173_s10, 2048  ;;  %p940_p12 = scmp.lt.s32.totalorder %s1173_s10, %s1173_s10 }
  0x35   : > { %p933_p5 = scmp.ne.s32.totalorder %s1173_s10, %s932_s7  ;;  %p941_p0 = scmp.lt.s32.totalorder %s932_s7, %s932_s7 }
  0x37   : > { %p935_p7 = pnand %p933_p5, %p893_p13  ;;  %p942_p1 = por %p941_p0, %p940_p12 }
  0x39   : > { %p936_p9 = pneg %p935_p7 }
  0x3b   : > { %p943_p4 = pnand %p942_p1, %p936_p9 }
  0x3d   : > { %946 = shalt.err (!%p943_p4)
}
  0x3e   : > { %819 = dma.hbm_to_vmem [thread:$0]  (!%p1169_p11), %s1370_s3, 2048, %s1173_s10, [#allocation7], %s1067_s25, %s1067_s25, %s1068_s6  }
  0x3f   : > { %s41_s12 = sadd.s32 1, %s1059_s22  ;;  %s48_s13 = sadd.s32 1, %s1051_s20 }
  0x40   : > { %p43_p13 = scmp.ge.s32.totalorder %s41_s12, 2  ;;  %p55_p6 = scmp.ne.s32.totalorder %s1051_s20, %s1047_s19 }
  0x41   : > { %p56_p10 = scmp.eq.s32.totalorder %s1063_s23, 0  ;;  %p830_p3 = scmp.lt.s32.totalorder %s1063_s23, 2 }
  0x42   : > { %s1396_s12 = smov (%p43_p13, %s41_s12), 0  ;;  %p1237_p7 = por %p1142_p2, %p55_p6 }
  0x43   : > { %p57_p5 = por %p56_p10, %p55_p6  ;;  %s45_s14 = ssub.s32 %s1059_s22, %s1396_s12 }
  0x44   : > { %s1383_s8 = scalar_select %p1237_p7, 1, 0 }
  0x45   : > { %s263_s15 = sand.u32 1, %s1051_s20   ;;  %p46_p9 = scmp.eq.s32.totalorder %s45_s14, 0 }
  0x46   : > { %s689_s10 = sshll.u32 %s263_s15, 3  ;;  %s690_s25 = sshll.u32 %s1059_s22, 7 }
  0x47   : > { %s1246_s6 = scalar_select %p46_p9, %s1051_s20, %s48_s13  }
  0x48   : > { %s1251_s24 = scalar_lea.hbm %s1367_s0, %s690_s25  ;;  %s267_s27 = scalar_lea.vmem [#allocation3], %s689_s10 }
  0x49   : > { %s274_s7 = sshll.u32 %s267_s27, 4  ;;  %p1255_p2 = pnand %p830_p3, %p57_p5  ;;  %s1259_s7 = int_to_ptr.vmem [resolvable:$true] %s274_s7 }
  0x4a   : > { %s264_s11 = scalar_lea.sflag [#allocation4], %s263_s15  ;;  %s947_s13 = scalar_lea.hbm %s1251_s24, 128 }
  0x4b   : > { %p948_p11 = scmp.ne.s32.totalorder %s1251_s24, %s947_s13  ;;  %p949_p12 = pneg %p1255_p2 }
  0x4c   : > { %s952_s25 = scalar_lea.hbm %s1367_s0, 256  ;;  %p953_p4 = scmp.lt.u32.totalorder %s1251_s24, %s1367_s0 }
  0x4d   : > { %p950_p0 = pnand %p949_p12, %p948_p11  ;;  %p954_p13 = scmp.lt.u32.totalorder %s952_s25, %s947_s13 }
  0x4e   : > { %p956_p10 = scmp.lt.u32.totalorder %s947_s13, %s1251_s24 }
  0x4f   : > { %p951_p1 = pneg %p950_p0  ;;  %p955_p6 = por %p954_p13, %p953_p4 }
  0x51   : > { %p957_p3 = por %p956_p10, %p955_p6 }
  0x53   : > { %p958_p5 = pnand %p957_p3, %p951_p1 }
  0x55   : > { %961 = shalt.err (!%p958_p5)
}
  0x56   : > { %s962_s15 = scalar_lea.vmem %s1259_s7, 128  ;;  %s1069_s27 = smov [#allocation3]  }
  0x57   : > { %p963_p9 = scmp.ne.s32.totalorder %s1259_s7, %s962_s15  ;;  %s967_s14 = sshll.u32 %s1069_s27, 4  ;;  %s968_s14 = int_to_ptr.vmem [resolvable:$false] %s967_s14 }
  0x58   : > { %s969_s10 = scalar_lea.vmem %s968_s14, 256  ;;  %p970_p7 = scmp.lt.s32.totalorder %s1259_s7, %s968_s14 }
  0x59   : > { %p965_p11 = pnand %p963_p9, %p949_p12  ;;  %p971_p4 = scmp.lt.s32.totalorder %s969_s10, %s962_s15 }
  0x5b   : > { %p966_p0 = pneg %p965_p11  ;;  %p972_p13 = por %p971_p4, %p970_p7 }
  0x5d   : > { %p973_p6 = pnand %p972_p13, %p966_p0 }
  0x5f   : > { %976 = shalt.err (!%p973_p6)
}
  0x60   : > { %823 = dma.hbm_to_vmem [thread:$0]  (!%p1255_p2), %s1251_s24, 128, %s1259_s7, %s264_s11  }
  0x61   : > { %283 = sbr.rel (%p1158_p8) target bundleno = 578 (0x242), region = 40  ;;  %s1289_s13 = sand.u32 (!%p1158_p8), 1, %s1047_s19  }
  0x62   : > { %s692_s25 = sshll.u32 (!%p1158_p8), %s1289_s13, 3  ;;  %s286_s16 = scalar_lea.sflag (!%p1158_p8), [#allocation4], %s1289_s13 }
  0x63   : > { %s1295_s17 = scalar_lea.vmem (!%p1158_p8), [#allocation3], %s692_s25  ;;  %p1385_p7 = scmp.ne.s32.totalorder (!%p1158_p8), %s1379_s28, 0 }
  0x68   : > { %1030 = dma.done.wait (%p1385_p7), %s286_s16, 128  }
  0x69   : > { %1032 = vsyncadd (%p1385_p7), %s286_s16, 4294967168  ;;  %p1386_p2 = scmp.ne.s32.totalorder %s1377_s26, 0 }
  0x6b   : > { %1034 = dma.done.wait (%p1386_p2), [#allocation7], 2560  }
  0x6c   : > { %1036 = vsyncadd (%p1386_p2), [#allocation7], 4294964736  ;;  %v1070_v0 = vmov 0.0|0.0   ;;  %vm1071_vm0 = vmmov 0   ;;  %v1072_v1 = vmov 0.0   ;;  %v343_v2 = vld [vmem:[#allocation6] sm:$0xff] }
  0x6d   : > { %771 = vmatprep.subr.bf16.mxu0 %v1070_v0  ;;  %733 = vmatprep.mubr.msk.f32.mxu0 %vm1071_vm0, %v1072_v1  ;;  %v344_v3 = vld [vmem:[#allocation6 + $0x8] sm:$0xff]  ;;  %v345_v4 = vld [vmem:[#allocation6 + $0x10] sm:$0xff]  ;;  %v346_v6 = vld [vmem:[#allocation6 + $0x18] sm:$0xff]  ;;  %vm354_vm1 = vcmask 261120   ;;  %s700_s7 = sshll.u32 %s1055_s21, 7  ;;  %s329_s9 = scalar_lea.vmem [#allocation9], %s692_s25 }
  0x6e   : > { %777 = vmatprep.subr.bf16.mxu1 %v1070_v0  ;;  %768 = vmatprep.mubr.msk.f32.mxu1 %vm1071_vm0, %v1072_v1  ;;  %v772_v5 = vpack.c.bf16 %v344_v3, %v343_v2  ;;  %v434_v7 = vld [vmem:[#allocation8] sm:$0xff]  ;;  %v435_v8 = vld [vmem:[#allocation8 + $0x8] sm:$0xff]  ;;  %v436_v9 = vld [vmem:[#allocation8 + $0x10] sm:$0xff]  ;;  %v775_v11 = vpack.c.bf16 %v346_v6, %v345_v4  ;;  %s550_s11 = sshll.u32 %s329_s9, 4  ;;  %s1318_s14 = scalar_lea.hbm %s1372_s5, %s700_s7  ;;  %s1320_s11 = int_to_ptr.vmem [resolvable:$true] %s550_s11 }
  0x6f   : > { %v437_v10 = vld [vmem:[#allocation8 + $0x18] sm:$0xff]  ;;  %v778_v12 = vpack.c.bf16 %v435_v8, %v434_v7  ;;  %v438_v14 = vld [vmem:[#allocation8 + $0x20] sm:$0xff]  ;;  %v439_v15 = vld [vmem:[#allocation8 + $0x28] sm:$0xff]  ;;  %s536_s10 = scalar_lea.sflag [#allocation5], %s1289_s13  ;;  %s977_s16 = scalar_lea.vmem %s1320_s11, 128 }
  0x70   : > { %773 = vmatpush3.bf16.msra.mxu0 %v772_v5  ;;  %v781_v13 = vpack.c.bf16 %v437_v10, %v436_v9  ;;  %v342_v16 = vld [vmem:[%s1295_s17] sm:$0xff]  ;;  %v784_v17 = vpack.c.bf16 %v439_v15, %v438_v14  ;;  %v442_v21 = vld [vmem:[#allocation8 + $0x40] sm:$0xff]  ;;  %v443_v22 = vld [vmem:[#allocation8 + $0x48] sm:$0xff]  ;;  %p978_p8 = scmp.ne.s32.totalorder %s1320_s11, %s977_s16  ;;  %p1387_p12 = scmp.ne.s32.totalorder %s1383_s8, 0 }
  0x71   : > { %774 = vmatprep.subr.bf16.mxu0 %v1070_v0  ;;  %779 = vmatpush3.bf16.msra.mxu1 %v778_v12  ;;  %v440_v18 = vld [vmem:[#allocation8 + $0x30] sm:$0xff]  ;;  %v441_v19 = vld [vmem:[#allocation8 + $0x38] sm:$0xff]  ;;  %v790_v23 = vpack.c.bf16 %v443_v22, %v442_v21  ;;  %v446_v27 = vld [vmem:[#allocation8 + $0x60] sm:$0xff]  ;;  %s1073_s21 = smov [#allocation9]  }
  0x72   : > { %780 = vmatprep.subr.bf16.mxu1 %v1070_v0  ;;  %v787_v20 = vpack.c.bf16 %v441_v19, %v440_v18  ;;  %v444_v24 = vld [vmem:[#allocation8 + $0x50] sm:$0xff]  ;;  %v445_v25 = vld [vmem:[#allocation8 + $0x58] sm:$0xff]  ;;  %v447_v28 = vld [vmem:[#allocation8 + $0x68] sm:$0xff]  ;;  %p979_p1 = pnand %p978_p8, %p1387_p12  ;;  %s981_s25 = sshll.u32 %s1073_s21, 4  ;;  %s982_s25 = int_to_ptr.vmem [resolvable:$false] %s981_s25 }
  0x73   : > { %v793_v26 = vpack.c.bf16 %v445_v25, %v444_v24  ;;  %v796_v29 = vpack.c.bf16 %v447_v28, %v446_v27  ;;  %v448_v30 = vld [vmem:[#allocation8 + $0x70] sm:$0xff]  ;;  %v449_v31 = vld [vmem:[#allocation8 + $0x78] sm:$0xff]  ;;  %s983_s17 = scalar_lea.vmem %s982_s25, 256  ;;  %p984_p3 = scmp.lt.s32.totalorder %s1320_s11, %s982_s25 }
  0x74   : > { %776 = vmatpush3.bf16.msra.mxu0 %v775_v11  ;;  %v799_v32 = vpack.c.bf16 %v449_v31, %v448_v30  ;;  %v696_v33 = vld [vmem:[%s1369_s2] ss:$0 sm:$0xff]  ;;  %p980_p10 = pneg %p979_p1  ;;  %p985_p5 = scmp.lt.s32.totalorder %s983_s17, %s977_s16 }
  0x75   : > { %782 = vmatpush3.bf16.msra.mxu1 %v781_v13  ;;  %v698_v42 = vld [vmem:[%s1371_s4] ss:$0 sm:$0xff] }
  0x76   : > { %783 = vmatprep.subr.bf16.mxu1 %v1070_v0  ;;  %p986_p9 = por %p985_p5, %p984_p3 }
  0x77   : > { %734 = vmatmul.mubr.msk.f32.vlgmr.msra.gmra.mrb[0].mxu0 %vm354_vm1, %v342_v16 }
  0x78   : > { %p987_p11 = pnand %p986_p9, %p980_p10 }
  0x79   : > { %785 = vmatpush3.bf16.msra.mxu1 %v784_v17 }
  0x7a   : > { %786 = vmatprep.subr.bf16.mxu1 %v1070_v0 }
  0x7d   : > { %788 = vmatpush3.bf16.msra.mxu1 %v787_v20 }
  0x7e   : > { %789 = vmatprep.subr.bf16.mxu1 %v1070_v0 }
  0x81   : > { %791 = vmatpush3.bf16.msra.mxu1 %v790_v23 }
  0x82   : > { %792 = vmatprep.subr.bf16.mxu1 %v1070_v0 }
  0x85   : > { %794 = vmatpush3.bf16.msra.mxu1 %v793_v26 }
  0x86   : > { %795 = vmatprep.subr.bf16.mxu1 %v1070_v0 }
  0x89   : > { %797 = vmatpush3.bf16.msra.mxu1 %v796_v29 }
  0x8a   : > { %798 = vmatprep.subr.bf16.mxu1 %v1070_v0 }
  0x8d   : > { %800 = vmatpush3.bf16.msra.mxu1 %v799_v32 }
 0x14a   : > { %v424_v34 = vpop.f32.mrb[0].mxu0 }
 0x14b   : > { %v425_v35 = vadd.f32 %v696_v33, %v424_v34  ;;  %v735_v36 = vpop.f32.mrb[1].mxu0 }
 0x14d   : > { %v429_v37 = vmul.f32 0.70710677, %v425_v35  ;;  %v428_v39 = vmul.f32 0.5, %v425_v35 }
 0x14f   : > { %889 = verf.f32 %v429_v37 }
 0x159   : > { %v890_v38 = vpop.eup %889 }
 0x15a   : > { %v431_v40 = vadd.f32 1.0, %v890_v38 }
 0x15c   : > { %v432_v41 = vmul.f32 %v431_v40, %v428_v39 }
 0x15e   : > { %769 = vmatmul.mubr.f32.vlgmr.msra.gmra.mrb[0].mxu1 %v432_v41 }
 0x231   : > { %v516_v43 = vpop.f32.mrb[0].mxu1 }
 0x232   : > { %v533_v44 = vadd.f32 %v698_v42, %v516_v43  ;;  %v770_v45 = vpop.f32.mrb[1].mxu1 }
 0x234   : > { %534 = vst [vmem:[%s329_s9] sm:$0xff] %v533_v44 }
 0x235   : > { %990 = shalt.err (!%p987_p11)
}
 0x236   : > { %s991_s13 = scalar_lea.hbm %s1318_s14, 128  ;;  %s995_s30 = scalar_lea.hbm %s1372_s5, 256 }
 0x237   : > { %p992_p0 = scmp.ne.s32.totalorder %s1318_s14, %s991_s13  ;;  %p996_p6 = scmp.lt.u32.totalorder %s1318_s14, %s1372_s5 }
 0x238   : > { %p997_p7 = scmp.lt.u32.totalorder %s995_s30, %s991_s13  ;;  %p999_p8 = scmp.lt.u32.totalorder %s991_s13, %s1318_s14 }
 0x239   : > { %p993_p4 = pnand %p992_p0, %p1387_p12 }
 0x23a   : > { %p998_p2 = por %p997_p7, %p996_p6 }
 0x23b   : > { %p994_p13 = pneg %p993_p4 }
 0x23c   : > { %p1000_p1 = por %p999_p8, %p998_p2 }
 0x23e   : > { %p1001_p10 = pnand %p1000_p1, %p994_p13 }
 0x240   : > { %1004 = shalt.err (!%p1001_p10)
}
 0x241   : > { %811 = dma.vmem_to_hbm [thread:$0]  (%p1387_p12), %s1320_s11, 128, %s1318_s14, %s536_s10  }
 0x242 PF: > { %s562_s9 = sand.u32 1, %s1043_s18   ;;  %p1388_p3 = scmp.ne.s32.totalorder %s1380_s29, 0 }
 0x243   : > { %p1389_p5 = scmp.ge.s32.totalorder %s1063_s23, 2  ;;  %s563_s15 = scalar_lea.sflag [#allocation5], %s562_s9 }
 0x245   : > { %p825_p9 = pnand %p1389_p5, %p1388_p3 }
 0x247   : > { %1038 = dma.done.wait (!%p825_p9), %s563_s15, 128  }
 0x248   : > { %1040 = vsyncadd (!%p825_p9), %s563_s15, 4294967168  ;;  %s22_s23 = sadd.s32 1, %s1063_s23   ;;  %s1390_s18 = smov %s1047_s19 }
 0x249   : > { %p19_p11 = scmp.ge.s32.totalorder %s22_s23, 4   ;;  %s1391_s19 = smov %s1051_s20 }
 0x24a   : > { %s1392_s20 = smov %s1246_s6  ;;  %s1393_s21 = smov %s1059_s22 }
 0x24b   : > { %s1394_s22 = smov %s1396_s12  ;;  %21 = sbr.rel (!%p19_p11) target bundleno = 7 (0x7), region = 109 }
 0x252   :  { %568 = vsyncpa [#allocation4], 1 }
 0x253   :  { %570 = vsyncpa [#allocation4 + $0x1], 1 }
 0x254   :  { %571 = vsyncpa [#allocation7], 1 }
 0x255   :  { %572 = vsyncpa [#allocation5], 1 }
 0x256   :  { %574 = vsyncpa [#allocation5 + $0x1], 1 }

</bundles_post_ra>
